<compile_context>
chip_gen: v7x
topology: tpu7x:2x2x1
jax: 0.10.0
libtpu: 0.0.40
codegen_flags: <defaults>
</compile_context>

<pallas_src>
import functools

import jax
import jax.numpy as jnp
import numpy as np
from jax.experimental import pallas as pl
from jax.experimental.pallas import tpu as pltpu


# ----------------------------------------------------------------------------
# Shared per-layer math: node-space shift, element membership, Lagrange basis.
# ----------------------------------------------------------------------------
def _shift_and_basis(x, *, n_order, n_elements, x_min, x_max):
    """x: (R, S). Returns id_el_f (R, S) float element id and list of phi_j (R, S)."""
    n_nodes = n_elements * n_order + 1
    scale = (n_nodes - 1) / (x_max - x_min)          # folded at trace time
    x_shift = (x - x_min) * scale
    # reciprocal-mul instead of divide; at exact element boundaries this can
    # differ from the reference by one element, but the basis is continuous
    # there so the value only differs at f32 rounding level.
    id_el_f = jnp.clip(jnp.floor(x_shift * (1.0 / n_order)),
                       0.0, float(n_elements - 1))
    nodes_l = id_el_f * float(n_order)
    x_t = (x_shift - nodes_l) * (2.0 / n_order) - 1.0   # reference coord in [-1, 1]

    nodes = [-1.0 + 2.0 * j / n_order for j in range(n_order + 1)]
    diffs = [x_t - nodes[m] for m in range(n_order + 1)]
    phi_local = []
    for j in range(n_order + 1):
        p = None
        denom = 1.0
        for m in range(n_order + 1):
            if m != j:
                denom *= (nodes[j] - nodes[m])
                p = diffs[m] if p is None else p * diffs[m]
        phi_local.append(p * (1.0 / denom))
    return id_el_f, phi_local


def _inner_layer(x, w_slots, e_iota_f, *, n_width, n_order, n_elements,
                 x_min, x_max):
    """Inner LagrangeKANN layer. x: (1, S) (basis is width-independent).

    w_slots: ((n_order+1)*n_width, k_pad) with
             w_slots[j*n_width + k, e] = w_inner[k, e*n_order + j]
    e_iota_f: (k_pad, S) float iota over elements (hoisted out of the chunk loop).
    Returns t_ik (n_width, S).
    """
    id_el_f, phi_local = _shift_and_basis(
        x, n_order=n_order, n_elements=n_elements, x_min=x_min, x_max=x_max)
    # element one-hot membership, (k_pad, S); padded rows never match -> 0
    mask = (e_iota_f == id_el_f).astype(jnp.float32)
    # Per-sample gather of the (n_order+1) local weight columns on the idle MXU:
    #   g[j*W + k, s] = w_inner[k, id_el[s]*n_order + j]
    g = jnp.dot(w_slots, mask, preferred_element_type=jnp.float32)
    t = None
    for j in range(n_order + 1):
        term = g[j * n_width:(j + 1) * n_width, :] * phi_local[j]   # (W,S)*(1,S)
        t = term if t is None else t + term
    return t


def _outer_layer(x, weight, *, n_width, n_order, n_elements, x_min, x_max):
    """Outer LagrangeKANN layer. x: (n_width, S) (basis differs per width)."""
    id_el_f, phi_local = _shift_and_basis(
        x, n_order=n_order, n_elements=n_elements, x_min=x_min, x_max=x_max)
    # fused scatter + contraction: element masks are disjoint -> where-select
    t = None
    for e in range(n_elements):
        base = e * n_order
        acc = None
        for j in range(n_order + 1):
            w_col = weight[:, base + j:base + j + 1]       # (W, 1), built per element
            term = w_col * phi_local[j]
            acc = term if acc is None else acc + term
        if t is None:
            t = acc      # samples outside element 0 get overwritten below
        else:
            t = jnp.where(id_el_f == float(e), acc, t)
    return t


def _kann_kernel(x_ref, w_slots_ref, w_out_ref, o_ref, *, cfg, chunk, n_chunks,
                 k_pad):
    w_slots = w_slots_ref[...]                         # ((O+1)*W, k_pad)
    w_out = w_out_ref[...]                             # (W, n_nodes)
    # hoisted: element-index iota reused by every chunk
    e_iota_f = jax.lax.broadcasted_iota(
        jnp.int32, (k_pad, chunk), 0).astype(jnp.float32)

    # Process the (large) sample tile in 512-lane chunks so live intermediates
    # stay within vreg budget while the per-grid-step overhead is amortized
    # over the whole tile. Offsets are static (python loop) -> plain aligned
    # vector loads/stores.
    for c in range(n_chunks):
        c0 = c * chunk
        x = x_ref[:, c0:c0 + chunk]                                  # (1, chunk)
        t_inner = _inner_layer(x, w_slots, e_iota_f, **cfg)          # (W, chunk)
        t_outer = _outer_layer(t_inner, w_out, **cfg)                # (W, chunk)
        # einsum('ik -> i'): reduce over width (sublanes) -> lane-dense row
        o_ref[:, c0:c0 + chunk] = jnp.sum(t_outer, axis=0, keepdims=True)


# ----------------------------------------------------------------------------
# Wrapper
# ----------------------------------------------------------------------------
def kann_forward(x, w_inner, w_outer, *, n_width, n_order, n_elements,
                 x_min, x_max):
    """KANN.forward. x: (n_samples,), weights: (n_width, n_nodes)."""
    n_samples = x.shape[0]
    n_nodes = n_elements * n_order + 1

    LANE = 128       # lane width
    CHUNK = 512      # in-kernel sub-tile (keeps live intermediates ~4 vregs each)
    MAX_TILE = 4096  # per-grid-step sample tile; even double-buffered this is
                     # <100 KB of blocks -> far below v7x's 64 MiB VMEM.

    s_lanes = pl.cdiv(n_samples, LANE) * LANE
    if s_lanes <= CHUNK:
        tile_s = s_lanes                       # single small step; overhead negligible
    else:
        # >= 2 grid steps so v7x can shard the sample axis over both TensorCores,
        # with tiles large enough to amortize the ~600-cycle per-step overhead.
        tile_s = min(MAX_TILE, pl.cdiv(pl.cdiv(s_lanes, 2), CHUNK) * CHUNK)
    s_pad = pl.cdiv(s_lanes, tile_s) * tile_s
    chunk = min(CHUNK, tile_s)
    n_chunks = tile_s // chunk

    # pad with x_min (benign: element 0, in-range reference coordinate)
    x_row = jnp.full((1, s_pad), x_min, dtype=jnp.float32)
    x_row = x_row.at[0, :n_samples].set(x.astype(jnp.float32))

    # Pre-expand the inner weights into "slot" layout so the kernel's per-sample
    # weight gather is a single tiny MXU matmul (no in-kernel lane extracts):
    #   w_slots[j*n_width + k, e] = w_inner[k, e*n_order + j]
    k_pad = pl.cdiv(n_elements, 8) * 8
    cols = jnp.arange(n_elements) * n_order
    w_in_f32 = w_inner.astype(jnp.float32)
    w_slots = jnp.stack([w_in_f32[:, cols + j] for j in range(n_order + 1)],
                        axis=0)                                  # (O+1, W, E)
    w_slots = w_slots.reshape((n_order + 1) * n_width, n_elements)
    w_slots = jnp.zeros(((n_order + 1) * n_width, k_pad),
                        jnp.float32).at[:, :n_elements].set(w_slots)

    w_out = w_outer.astype(jnp.float32)                          # (W, n_nodes)

    cfg = dict(n_width=n_width, n_order=n_order, n_elements=n_elements,
               x_min=x_min, x_max=x_max)
    kernel = functools.partial(_kann_kernel, cfg=cfg, chunk=chunk,
                               n_chunks=n_chunks, k_pad=k_pad)

    out = pl.pallas_call(
        kernel,
        out_shape=jax.ShapeDtypeStruct((1, s_pad), jnp.float32),
        grid=(s_pad // tile_s,),
        in_specs=[
            pl.BlockSpec((1, tile_s), lambda i: (0, i)),                      # x tile
            pl.BlockSpec(((n_order + 1) * n_width, k_pad), lambda i: (0, 0)),  # inner slots
            pl.BlockSpec((n_width, n_nodes), lambda i: (0, 0)),               # outer weight
        ],
        out_specs=pl.BlockSpec((1, tile_s), lambda i: (0, i)),
        compiler_params=pltpu.CompilerParams(
            dimension_semantics=("parallel",)),                   # 2 TCs on v7x
    )(x_row, w_slots, w_out)
    return out[0, :n_samples]


# ----------------------------------------------------------------------------
# Pure-JAX reference (mirrors the torch code structurally, incl. phi_ikp scatter)
# ----------------------------------------------------------------------------
def _layer_ref(x, weight, *, n_width, n_order, n_elements, x_min, x_max):
    n_nodes = n_elements * n_order + 1
    if x.ndim != 2:
        x = jnp.repeat(x[:, None], n_width, axis=1)
    x_shift = (n_nodes - 1) * (x - x_min) / (x_max - x_min)
    id_el = jnp.clip(jnp.floor(x_shift / n_order), 0, n_elements - 1)
    nodes_l = (id_el * n_order).astype(jnp.int32)
    x_t = (x_shift - 0.5 * (2 * nodes_l + n_order)) / (0.5 * n_order)

    nodes = jnp.linspace(-1.0, 1.0, n_order + 1)
    plist = []
    for j in range(n_order + 1):
        p = jnp.ones_like(x_t)
        for m in range(n_order + 1):
            if m != j:
                p = p * (x_t - nodes[m]) / (nodes[j] - nodes[m])
        plist.append(p)
    phi_local = jnp.stack(plist, axis=-1)                       # (S, W, O+1)

    p_idx = nodes_l[..., None] + jnp.arange(n_order + 1)        # (S, W, O+1)
    onehot = jax.nn.one_hot(p_idx, n_nodes, dtype=jnp.float32)
    phi_ikp = jnp.einsum('iwj,iwjp->iwp', phi_local, onehot)    # scatter
    return jnp.einsum('kp,ikp->ik', weight, phi_ikp)            # t_ik


def kann_forward_ref(x, w_inner, w_outer, *, n_width, n_order, n_elements,
                     x_min, x_max):
    cfg = dict(n_width=n_width, n_order=n_order, n_elements=n_elements,
               x_min=x_min, x_max=x_max)
    t1 = _layer_ref(x, w_inner, **cfg)
    t2 = _layer_ref(t1, w_outer, **cfg)
    return jnp.sum(t2, axis=1)


# ----------------------------------------------------------------------------
# TODO(synk): only the t_ik path used by KANN.forward is implemented; the
#             dt_ik / ddt_ik / phi_ikp outputs of LagrangeKANN.forward (unused
#             by KANN.forward) are not computed in the kernel.
if __name__ == "__main__":
    n_width = 8
    n_order = 3
    n_elements = 5
    n_nodes = n_elements * n_order + 1      # 16
    x_min, x_max = 0.0, 1.0

    key = jax.random.PRNGKey(0)
    kx, kwi, kwo = jax.random.split(key, 3)
    # deterministic non-zero weights (original torch init is zeros -> trivial output)
    w_inner = 0.1 * jax.random.normal(kwi, (n_width, n_nodes), dtype=jnp.float32)
    w_outer = 0.1 * jax.random.normal(kwo, (n_width, n_nodes), dtype=jnp.float32)

    cfg = dict(n_width=n_width, n_order=n_order, n_elements=n_elements,
               x_min=x_min, x_max=x_max)

    # two sizes: (a) small single-step path, (b) multi-step + multi-chunk path
    for n_samples in (200, 1500):
        x = jax.random.uniform(kx, (n_samples,), dtype=jnp.float32,
                               minval=x_min, maxval=x_max)
        y = jax.block_until_ready(kann_forward(x, w_inner, w_outer, **cfg))
        y_ref = jax.block_until_ready(kann_forward_ref(x, w_inner, w_outer, **cfg))
        np.testing.assert_allclose(np.asarray(y), np.asarray(y_ref),
                                   rtol=1e-4, atol=1e-5)

    print("KERNEL_OK")
</pallas_src>

<mosaic_0001>
module attributes {stable_mosaic.version = 11 : i64} {
  func.func @_kann_kernel(%arg0: i32, %arg1: memref<1x256xf32, #tpu.memory_space<vmem>>, %arg2: memref<32x8xf32, #tpu.memory_space<vmem>>, %arg3: memref<8x16xf32, #tpu.memory_space<vmem>>, %arg4: memref<1x256xf32, #tpu.memory_space<vmem>>) attributes {dimension_semantics = [#tpu.dimension_semantics<parallel>], iteration_bounds = array<i64: 1>, scalar_prefetch = 0 : i64, scratch_operands = 0 : i64, tpu.core_type = #tpu.core_type<tc>, window_params = [{transform_indices = @transform_0, window_bounds = array<i64: 1, 256>}, {pipeline_mode = #tpu.pipeline_mode<synchronous>, transform_indices = @transform_1, window_bounds = array<i64: 32, 8>}, {pipeline_mode = #tpu.pipeline_mode<synchronous>, transform_indices = @transform_2, window_bounds = array<i64: 8, 16>}, {transform_indices = @transform_3, window_bounds = array<i64: 1, 256>}]} {
    %c0 = arith.constant 0 : index
    %c0_0 = arith.constant 0 : index
    %0 = vector.load %arg2[%c0, %c0_0] : memref<32x8xf32, #tpu.memory_space<vmem>>, vector<32x8xf32>
    %c0_1 = arith.constant 0 : index
    %c0_2 = arith.constant 0 : index
    %1 = vector.load %arg3[%c0_1, %c0_2] : memref<8x16xf32, #tpu.memory_space<vmem>>, vector<8x16xf32>
    %2 = tpu.iota {dimensions = array<i32: 0>} : vector<8x256xi32>
    %3 = arith.sitofp %2 : vector<8x256xi32> to vector<8x256xf32>
    %c0_3 = arith.constant 0 : index
    %c0_4 = arith.constant 0 : index
    %4 = vector.load %arg1[%c0_3, %c0_4] : memref<1x256xf32, #tpu.memory_space<vmem>>, vector<1x256xf32>
    %cst = arith.constant 0.000000e+00 : f32
    %5 = vector.broadcast %cst : f32 to vector<1x256xf32>
    %6 = arith.subf %4, %5 : vector<1x256xf32>
    %cst_5 = arith.constant 1.500000e+01 : f32
    %7 = vector.broadcast %cst_5 : f32 to vector<1x256xf32>
    %8 = arith.mulf %6, %7 : vector<1x256xf32>
    %cst_6 = arith.constant 0.333333343 : f32
    %9 = vector.broadcast %cst_6 : f32 to vector<1x256xf32>
    %10 = arith.mulf %8, %9 : vector<1x256xf32>
    %11 = math.floor %10 : vector<1x256xf32>
    %cst_7 = arith.constant 0.000000e+00 : f32
    %cst_8 = arith.constant 4.000000e+00 : f32
    %12 = vector.broadcast %cst_7 : f32 to vector<1x256xf32>
    %13 = arith.maximumf %12, %11 : vector<1x256xf32>
    %14 = vector.broadcast %cst_8 : f32 to vector<1x256xf32>
    %15 = arith.minimumf %14, %13 : vector<1x256xf32>
    %cst_9 = arith.constant 3.000000e+00 : f32
    %16 = vector.broadcast %cst_9 : f32 to vector<1x256xf32>
    %17 = arith.mulf %15, %16 : vector<1x256xf32>
    %18 = arith.subf %8, %17 : vector<1x256xf32>
    %cst_10 = arith.constant 0.666666686 : f32
    %19 = vector.broadcast %cst_10 : f32 to vector<1x256xf32>
    %20 = arith.mulf %18, %19 : vector<1x256xf32>
    %cst_11 = arith.constant 1.000000e+00 : f32
    %21 = vector.broadcast %cst_11 : f32 to vector<1x256xf32>
    %22 = arith.subf %20, %21 : vector<1x256xf32>
    %cst_12 = arith.constant -1.000000e+00 : f32
    %23 = vector.broadcast %cst_12 : f32 to vector<1x256xf32>
    %24 = arith.subf %22, %23 : vector<1x256xf32>
    %cst_13 = arith.constant -0.333333343 : f32
    %25 = vector.broadcast %cst_13 : f32 to vector<1x256xf32>
    %26 = arith.subf %22, %25 : vector<1x256xf32>
    %cst_14 = arith.constant 0.333333343 : f32
    %27 = vector.broadcast %cst_14 : f32 to vector<1x256xf32>
    %28 = arith.subf %22, %27 : vector<1x256xf32>
    %cst_15 = arith.constant 1.000000e+00 : f32
    %29 = vector.broadcast %cst_15 : f32 to vector<1x256xf32>
    %30 = arith.subf %22, %29 : vector<1x256xf32>
    %31 = arith.mulf %26, %28 : vector<1x256xf32>
    %32 = arith.mulf %31, %30 : vector<1x256xf32>
    %cst_16 = arith.constant -5.625000e-01 : f32
    %33 = vector.broadcast %cst_16 : f32 to vector<1x256xf32>
    %34 = arith.mulf %32, %33 : vector<1x256xf32>
    %35 = arith.mulf %24, %28 : vector<1x256xf32>
    %36 = arith.mulf %35, %30 : vector<1x256xf32>
    %cst_17 = arith.constant 1.687500e+00 : f32
    %37 = vector.broadcast %cst_17 : f32 to vector<1x256xf32>
    %38 = arith.mulf %36, %37 : vector<1x256xf32>
    %39 = arith.mulf %24, %26 : vector<1x256xf32>
    %40 = arith.mulf %39, %30 : vector<1x256xf32>
    %cst_18 = arith.constant -1.687500e+00 : f32
    %41 = vector.broadcast %cst_18 : f32 to vector<1x256xf32>
    %42 = arith.mulf %40, %41 : vector<1x256xf32>
    %43 = arith.mulf %24, %26 : vector<1x256xf32>
    %44 = arith.mulf %43, %28 : vector<1x256xf32>
    %cst_19 = arith.constant 5.625000e-01 : f32
    %45 = vector.broadcast %cst_19 : f32 to vector<1x256xf32>
    %46 = arith.mulf %44, %45 : vector<1x256xf32>
    %47 = vector.broadcast %15 : vector<1x256xf32> to vector<8x256xf32>
    %48 = arith.cmpf oeq, %3, %47 : vector<8x256xf32>
    %49 = arith.extui %48 : vector<8x256xi1> to vector<8x256xi32>
    %50 = arith.sitofp %49 : vector<8x256xi32> to vector<8x256xf32>
    %cst_20 = arith.constant dense<0.000000e+00> : vector<32x256xf32>
    %51 = tpu.matmul %0, %50, %cst_20 {dimension_numbers = #tpu.dot_dimension_numbers<[1], [0], [0], [1], [0, 0, 1, 1], [], []>} : vector<32x8xf32>, vector<8x256xf32>, vector<32x256xf32> -> vector<32x256xf32>
    %52 = vector.extract_strided_slice %51 {offsets = [0, 0], sizes = [8, 256], strides = [1, 1]} : vector<32x256xf32> to vector<8x256xf32>
    %53 = vector.broadcast %34 : vector<1x256xf32> to vector<8x256xf32>
    %54 = arith.mulf %52, %53 : vector<8x256xf32>
    %55 = vector.extract_strided_slice %51 {offsets = [8, 0], sizes = [8, 256], strides = [1, 1]} : vector<32x256xf32> to vector<8x256xf32>
    %56 = vector.broadcast %38 : vector<1x256xf32> to vector<8x256xf32>
    %57 = arith.mulf %55, %56 : vector<8x256xf32>
    %58 = arith.addf %54, %57 : vector<8x256xf32>
    %59 = vector.extract_strided_slice %51 {offsets = [16, 0], sizes = [8, 256], strides = [1, 1]} : vector<32x256xf32> to vector<8x256xf32>
    %60 = vector.broadcast %42 : vector<1x256xf32> to vector<8x256xf32>
    %61 = arith.mulf %59, %60 : vector<8x256xf32>
    %62 = arith.addf %58, %61 : vector<8x256xf32>
    %63 = vector.extract_strided_slice %51 {offsets = [24, 0], sizes = [8, 256], strides = [1, 1]} : vector<32x256xf32> to vector<8x256xf32>
    %64 = vector.broadcast %46 : vector<1x256xf32> to vector<8x256xf32>
    %65 = arith.mulf %63, %64 : vector<8x256xf32>
    %66 = arith.addf %62, %65 : vector<8x256xf32>
    %cst_21 = arith.constant 0.000000e+00 : f32
    %67 = vector.broadcast %cst_21 : f32 to vector<8x256xf32>
    %68 = arith.subf %66, %67 : vector<8x256xf32>
    %cst_22 = arith.constant 1.500000e+01 : f32
    %69 = vector.broadcast %cst_22 : f32 to vector<8x256xf32>
    %70 = arith.mulf %68, %69 : vector<8x256xf32>
    %cst_23 = arith.constant 0.333333343 : f32
    %71 = vector.broadcast %cst_23 : f32 to vector<8x256xf32>
    %72 = arith.mulf %70, %71 : vector<8x256xf32>
    %73 = math.floor %72 : vector<8x256xf32>
    %cst_24 = arith.constant 0.000000e+00 : f32
    %cst_25 = arith.constant 4.000000e+00 : f32
    %74 = vector.broadcast %cst_24 : f32 to vector<8x256xf32>
    %75 = arith.maximumf %74, %73 : vector<8x256xf32>
    %76 = vector.broadcast %cst_25 : f32 to vector<8x256xf32>
    %77 = arith.minimumf %76, %75 : vector<8x256xf32>
    %cst_26 = arith.constant 3.000000e+00 : f32
    %78 = vector.broadcast %cst_26 : f32 to vector<8x256xf32>
    %79 = arith.mulf %77, %78 : vector<8x256xf32>
    %80 = arith.subf %70, %79 : vector<8x256xf32>
    %cst_27 = arith.constant 0.666666686 : f32
    %81 = vector.broadcast %cst_27 : f32 to vector<8x256xf32>
    %82 = arith.mulf %80, %81 : vector<8x256xf32>
    %cst_28 = arith.constant 1.000000e+00 : f32
    %83 = vector.broadcast %cst_28 : f32 to vector<8x256xf32>
    %84 = arith.subf %82, %83 : vector<8x256xf32>
    %cst_29 = arith.constant -1.000000e+00 : f32
    %85 = vector.broadcast %cst_29 : f32 to vector<8x256xf32>
    %86 = arith.subf %84, %85 : vector<8x256xf32>
    %cst_30 = arith.constant -0.333333343 : f32
    %87 = vector.broadcast %cst_30 : f32 to vector<8x256xf32>
    %88 = arith.subf %84, %87 : vector<8x256xf32>
    %cst_31 = arith.constant 0.333333343 : f32
    %89 = vector.broadcast %cst_31 : f32 to vector<8x256xf32>
    %90 = arith.subf %84, %89 : vector<8x256xf32>
    %cst_32 = arith.constant 1.000000e+00 : f32
    %91 = vector.broadcast %cst_32 : f32 to vector<8x256xf32>
    %92 = arith.subf %84, %91 : vector<8x256xf32>
    %93 = arith.mulf %88, %90 : vector<8x256xf32>
    %94 = arith.mulf %93, %92 : vector<8x256xf32>
    %cst_33 = arith.constant -5.625000e-01 : f32
    %95 = vector.broadcast %cst_33 : f32 to vector<8x256xf32>
    %96 = arith.mulf %94, %95 : vector<8x256xf32>
    %97 = arith.mulf %86, %90 : vector<8x256xf32>
    %98 = arith.mulf %97, %92 : vector<8x256xf32>
    %cst_34 = arith.constant 1.687500e+00 : f32
    %99 = vector.broadcast %cst_34 : f32 to vector<8x256xf32>
    %100 = arith.mulf %98, %99 : vector<8x256xf32>
    %101 = arith.mulf %86, %88 : vector<8x256xf32>
    %102 = arith.mulf %101, %92 : vector<8x256xf32>
    %cst_35 = arith.constant -1.687500e+00 : f32
    %103 = vector.broadcast %cst_35 : f32 to vector<8x256xf32>
    %104 = arith.mulf %102, %103 : vector<8x256xf32>
    %105 = arith.mulf %86, %88 : vector<8x256xf32>
    %106 = arith.mulf %105, %90 : vector<8x256xf32>
    %cst_36 = arith.constant 5.625000e-01 : f32
    %107 = vector.broadcast %cst_36 : f32 to vector<8x256xf32>
    %108 = arith.mulf %106, %107 : vector<8x256xf32>
    %109 = vector.extract_strided_slice %1 {offsets = [0, 0], sizes = [8, 1], strides = [1, 1]} : vector<8x16xf32> to vector<8x1xf32>
    %110 = vector.broadcast %109 : vector<8x1xf32> to vector<8x256xf32>
    %111 = arith.mulf %110, %96 : vector<8x256xf32>
    %112 = vector.extract_strided_slice %1 {offsets = [0, 1], sizes = [8, 1], strides = [1, 1]} : vector<8x16xf32> to vector<8x1xf32>
    %113 = vector.broadcast %112 : vector<8x1xf32> to vector<8x256xf32>
    %114 = arith.mulf %113, %100 : vector<8x256xf32>
    %115 = arith.addf %111, %114 : vector<8x256xf32>
    %116 = vector.extract_strided_slice %1 {offsets = [0, 2], sizes = [8, 1], strides = [1, 1]} : vector<8x16xf32> to vector<8x1xf32>
    %117 = vector.broadcast %116 : vector<8x1xf32> to vector<8x256xf32>
    %118 = arith.mulf %117, %104 : vector<8x256xf32>
    %119 = arith.addf %115, %118 : vector<8x256xf32>
    %120 = vector.extract_strided_slice %1 {offsets = [0, 3], sizes = [8, 1], strides = [1, 1]} : vector<8x16xf32> to vector<8x1xf32>
    %121 = vector.broadcast %120 : vector<8x1xf32> to vector<8x256xf32>
    %122 = arith.mulf %121, %108 : vector<8x256xf32>
    %123 = arith.addf %119, %122 : vector<8x256xf32>
    %124 = vector.extract_strided_slice %1 {offsets = [0, 3], sizes = [8, 1], strides = [1, 1]} : vector<8x16xf32> to vector<8x1xf32>
    %125 = vector.broadcast %124 : vector<8x1xf32> to vector<8x256xf32>
    %126 = arith.mulf %125, %96 : vector<8x256xf32>
    %127 = vector.extract_strided_slice %1 {offsets = [0, 4], sizes = [8, 1], strides = [1, 1]} : vector<8x16xf32> to vector<8x1xf32>
    %128 = vector.broadcast %127 : vector<8x1xf32> to vector<8x256xf32>
    %129 = arith.mulf %128, %100 : vector<8x256xf32>
    %130 = arith.addf %126, %129 : vector<8x256xf32>
    %131 = vector.extract_strided_slice %1 {offsets = [0, 5], sizes = [8, 1], strides = [1, 1]} : vector<8x16xf32> to vector<8x1xf32>
    %132 = vector.broadcast %131 : vector<8x1xf32> to vector<8x256xf32>
    %133 = arith.mulf %132, %104 : vector<8x256xf32>
    %134 = arith.addf %130, %133 : vector<8x256xf32>
    %135 = vector.extract_strided_slice %1 {offsets = [0, 6], sizes = [8, 1], strides = [1, 1]} : vector<8x16xf32> to vector<8x1xf32>
    %136 = vector.broadcast %135 : vector<8x1xf32> to vector<8x256xf32>
    %137 = arith.mulf %136, %108 : vector<8x256xf32>
    %138 = arith.addf %134, %137 : vector<8x256xf32>
    %cst_37 = arith.constant 1.000000e+00 : f32
    %139 = vector.broadcast %cst_37 : f32 to vector<8x256xf32>
    %140 = arith.cmpf oeq, %77, %139 : vector<8x256xf32>
    %141 = arith.select %140, %138, %123 : vector<8x256xi1>, vector<8x256xf32>
    %142 = vector.extract_strided_slice %1 {offsets = [0, 6], sizes = [8, 1], strides = [1, 1]} : vector<8x16xf32> to vector<8x1xf32>
    %143 = vector.broadcast %142 : vector<8x1xf32> to vector<8x256xf32>
    %144 = arith.mulf %143, %96 : vector<8x256xf32>
    %145 = vector.extract_strided_slice %1 {offsets = [0, 7], sizes = [8, 1], strides = [1, 1]} : vector<8x16xf32> to vector<8x1xf32>
    %146 = vector.broadcast %145 : vector<8x1xf32> to vector<8x256xf32>
    %147 = arith.mulf %146, %100 : vector<8x256xf32>
    %148 = arith.addf %144, %147 : vector<8x256xf32>
    %149 = vector.extract_strided_slice %1 {offsets = [0, 8], sizes = [8, 1], strides = [1, 1]} : vector<8x16xf32> to vector<8x1xf32>
    %150 = vector.broadcast %149 : vector<8x1xf32> to vector<8x256xf32>
    %151 = arith.mulf %150, %104 : vector<8x256xf32>
    %152 = arith.addf %148, %151 : vector<8x256xf32>
    %153 = vector.extract_strided_slice %1 {offsets = [0, 9], sizes = [8, 1], strides = [1, 1]} : vector<8x16xf32> to vector<8x1xf32>
    %154 = vector.broadcast %153 : vector<8x1xf32> to vector<8x256xf32>
    %155 = arith.mulf %154, %108 : vector<8x256xf32>
    %156 = arith.addf %152, %155 : vector<8x256xf32>
    %cst_38 = arith.constant 2.000000e+00 : f32
    %157 = vector.broadcast %cst_38 : f32 to vector<8x256xf32>
    %158 = arith.cmpf oeq, %77, %157 : vector<8x256xf32>
    %159 = arith.select %158, %156, %141 : vector<8x256xi1>, vector<8x256xf32>
    %160 = vector.extract_strided_slice %1 {offsets = [0, 9], sizes = [8, 1], strides = [1, 1]} : vector<8x16xf32> to vector<8x1xf32>
    %161 = vector.broadcast %160 : vector<8x1xf32> to vector<8x256xf32>
    %162 = arith.mulf %161, %96 : vector<8x256xf32>
    %163 = vector.extract_strided_slice %1 {offsets = [0, 10], sizes = [8, 1], strides = [1, 1]} : vector<8x16xf32> to vector<8x1xf32>
    %164 = vector.broadcast %163 : vector<8x1xf32> to vector<8x256xf32>
    %165 = arith.mulf %164, %100 : vector<8x256xf32>
    %166 = arith.addf %162, %165 : vector<8x256xf32>
    %167 = vector.extract_strided_slice %1 {offsets = [0, 11], sizes = [8, 1], strides = [1, 1]} : vector<8x16xf32> to vector<8x1xf32>
    %168 = vector.broadcast %167 : vector<8x1xf32> to vector<8x256xf32>
    %169 = arith.mulf %168, %104 : vector<8x256xf32>
    %170 = arith.addf %166, %169 : vector<8x256xf32>
    %171 = vector.extract_strided_slice %1 {offsets = [0, 12], sizes = [8, 1], strides = [1, 1]} : vector<8x16xf32> to vector<8x1xf32>
    %172 = vector.broadcast %171 : vector<8x1xf32> to vector<8x256xf32>
    %173 = arith.mulf %172, %108 : vector<8x256xf32>
    %174 = arith.addf %170, %173 : vector<8x256xf32>
    %cst_39 = arith.constant 3.000000e+00 : f32
    %175 = vector.broadcast %cst_39 : f32 to vector<8x256xf32>
    %176 = arith.cmpf oeq, %77, %175 : vector<8x256xf32>
    %177 = arith.select %176, %174, %159 : vector<8x256xi1>, vector<8x256xf32>
    %178 = vector.extract_strided_slice %1 {offsets = [0, 12], sizes = [8, 1], strides = [1, 1]} : vector<8x16xf32> to vector<8x1xf32>
    %179 = vector.broadcast %178 : vector<8x1xf32> to vector<8x256xf32>
    %180 = arith.mulf %179, %96 : vector<8x256xf32>
    %181 = vector.extract_strided_slice %1 {offsets = [0, 13], sizes = [8, 1], strides = [1, 1]} : vector<8x16xf32> to vector<8x1xf32>
    %182 = vector.broadcast %181 : vector<8x1xf32> to vector<8x256xf32>
    %183 = arith.mulf %182, %100 : vector<8x256xf32>
    %184 = arith.addf %180, %183 : vector<8x256xf32>
    %185 = vector.extract_strided_slice %1 {offsets = [0, 14], sizes = [8, 1], strides = [1, 1]} : vector<8x16xf32> to vector<8x1xf32>
    %186 = vector.broadcast %185 : vector<8x1xf32> to vector<8x256xf32>
    %187 = arith.mulf %186, %104 : vector<8x256xf32>
    %188 = arith.addf %184, %187 : vector<8x256xf32>
    %189 = vector.extract_strided_slice %1 {offsets = [0, 15], sizes = [8, 1], strides = [1, 1]} : vector<8x16xf32> to vector<8x1xf32>
    %190 = vector.broadcast %189 : vector<8x1xf32> to vector<8x256xf32>
    %191 = arith.mulf %190, %108 : vector<8x256xf32>
    %192 = arith.addf %188, %191 : vector<8x256xf32>
    %cst_40 = arith.constant 4.000000e+00 : f32
    %193 = vector.broadcast %cst_40 : f32 to vector<8x256xf32>
    %194 = arith.cmpf oeq, %77, %193 : vector<8x256xf32>
    %195 = arith.select %194, %192, %177 : vector<8x256xi1>, vector<8x256xf32>
    %cst_41 = arith.constant dense<0.000000e+00> : vector<256xf32>
    %196 = vector.multi_reduction <add>, %195, %cst_41 [0] : vector<8x256xf32> to vector<256xf32>
    %197 = vector.shape_cast %196 : vector<256xf32> to vector<1x256xf32>
    %c0_42 = arith.constant 0 : index
    %c0_43 = arith.constant 0 : index
    %198 = vector.load %arg4[%c0_42, %c0_43] : memref<1x256xf32, #tpu.memory_space<vmem>>, vector<1x256xf32>
    tpu.vector_store %arg4[%c0_42, %c0_43], %197 {strides = array<i32>} : memref<1x256xf32, #tpu.memory_space<vmem>>, vector<1x256xf32>,
    return
  }
  func.func @transform_0(%arg0: i32) -> (i32, i32) {
    %c0_i32 = arith.constant 0 : i32
    %c0_i32_0 = arith.constant 0 : i32
    return %c0_i32, %arg0 : i32, i32
  }
  func.func @transform_1(%arg0: i32) -> (i32, i32) {
    %c0_i32 = arith.constant 0 : i32
    %c0_i32_0 = arith.constant 0 : i32
    %c0_i32_1 = arith.constant 0 : i32
    return %c0_i32, %c0_i32_0 : i32, i32
  }
  func.func @transform_2(%arg0: i32) -> (i32, i32) {
    %c0_i32 = arith.constant 0 : i32
    %c0_i32_0 = arith.constant 0 : i32
    %c0_i32_1 = arith.constant 0 : i32
    return %c0_i32, %c0_i32_0 : i32, i32
  }
  func.func @transform_3(%arg0: i32) -> (i32, i32) {
    %c0_i32 = arith.constant 0 : i32
    %c0_i32_0 = arith.constant 0 : i32
    return %c0_i32, %arg0 : i32, i32
  }
}

</mosaic_0001>

<bundles_post_ra>
// kernel: tpu_custom_call.1
= control target key start
LH: loop header
LB: loop body
LE: loop exit
PB: predicated region body
PF: predicated region fallthrough
CT: control target
= control target key end

     0   :  { %v20_v0 = vlaneseq  ;;  %v559_v3 = vmov 0.0   ;;  %v560_v4 = vmov 3   ;;  %v561_v8 = vmov 0   ;;  %s753_s0 = inlined_call_operand.vmem [shape: f32[1,256], index: 0, kind: input, shape index: {}]   ;;  %s754_s1 = inlined_call_operand.vmem [shape: f32[32,8], index: 1, kind: input, shape index: {}]   ;;  %s755_s2 = inlined_call_operand.vmem [shape: f32[8,16], index: 2, kind: input, shape index: {}]   ;;  %s756_s3 = inlined_call_operand.hbm [shape: f32[1,256], index: 3, kind: output, shape index: {}]  }
   0x1   :  { %v23_v1 = vld [vmem:[%s753_s0] sm:$0x3]  ;;  %142 = vmatprep.mubr.f32.mxu0 %v559_v3  ;;  %154 = vmatprep.mubr.f32.mxu1 %v559_v3 }
   0x2   :  { %v602_v2 = vmul.f32 15.0, %v23_v1  ;;  %520 = vset.pattern.permute.xlu1 %v560_v4  ;;  %v607_v5 = vld [vmem:[%s755_s2] sm:$0xff]  ;;  %v610_v6 = vshrl.u32 %v20_v0, 7  ;;  %518 = vset.pattern.permute.xlu0 %v561_v8 }
   0x3   :  { %297 = vperm.xlu1 %520, %v607_v5   ;;  %275 = vperm.xlu0 %518, %v607_v5  }
   0x4   :  { %v25_v7 = vmul.f32 0.33333334, %v602_v2 }
   0x5   :  { %8 = vsyncpa [#allocation3], 0  ;;  %v616_v11 = vsub.s32 1, %v610_v6  ;;  %v619_v12 = vsub.s32 0, %v610_v6  ;;  %v562_v13 = vmov 4   ;;  %v563_v14 = vmov 1  }
   0x6   :  { %v26_v9 = vfloor.f32 %v25_v7  ;;  %v22_v15 = vcvt.s32.f32 %v610_v6  ;;  %v564_v20 = vmov 6   ;;  %v15_v22 = vld [vmem:[%s754_s1] sm:$0xff]  ;;  %vm65_vm2 = vcmask 64512   ;;  %v17_v23 = vld [vmem:[%s754_s1 + $0x10] sm:$0xff]  ;;  %v16_v26 = vld [vmem:[%s754_s1 + $0x8] sm:$0xff] }
   0x7   :  { %521 = vset.pattern.permute.xlu1 %v562_v13  ;;  %519 = vset.pattern.permute.xlu0 %v563_v14  ;;  %v565_v24 = vmov 7   ;;  %v566_v25 = vmov 1.0   ;;  %v18_v27 = vld [vmem:[%s754_s1 + $0x18] sm:$0xff]  ;;  %v567_v28 = vmov 2   ;;  %v568_v29 = vmov 9   ;;  %s578_s1 = smov [#allocation2]  }
   0x8   :  { %v27_v10 = vmax.f32 %v26_v9, 0.0  ;;  %307 = vperm.xlu1 %521, %v607_v5   ;;  %281 = vperm.xlu0 %519, %v607_v5   ;;  %v569_v30 = vmov 5   ;;  %v570_v31 = vmov 12   ;;  %v571_v32 = vmov 10   ;;  %s465_s22 = sshll.u32 %s578_s1, 4  ;;  %s466_s22 = int_to_ptr.vmem [resolvable:$true] %s465_s22 }
   0x9   :  { %v572_v33 = vmov 14   ;;  %v573_v34 = vmov 8   ;;  %v574_v35 = vmov 15   ;;  %v575_v36 = vmov 13   ;;  %s535_s23 = scalar_lea.vmem %s466_s22, 32  ;;  %p540_p1 = scmp.lt.s32.totalorder %s466_s22, %s466_s22 }
   0xa   :  { %v28_v16 = vmin.f32 %v27_v10, 4.0  ;;  %v576_v37 = vmov 11   ;;  %vm456_vm11 = vcmp.lt.s32.totalorder %v20_v0, 256  ;;  %p536_p0 = scmp.ne.s32.totalorder %s466_s22, %s535_s23  ;;  %p541_p2 = scmp.lt.s32.totalorder %s535_s23, %s535_s23 }
   0xc   :  { %v29_v17 = vmul.f32 3.0, %v28_v16  ;;  %v56_v18 = vrot.slane %v28_v16, %v616_v11  ;;  %v52_v19 = vrot.slane %v28_v16, %v619_v12  ;;  %522 = vset.pattern.permute.xlu1 %v564_v20  ;;  %523 = vset.pattern.permute.xlu0 %v565_v24  ;;  %p542_p3 = por %p541_p2, %p540_p1 }
   0xd   :  { %323 = vperm.xlu1 %522, %v607_v5   ;;  %337 = vperm.xlu0 %523, %v607_v5  }
   0xe   :  { %v30_v21 = vsub.f32 %v602_v2, %v29_v17  ;;  %vm60_vm0 = vcmp.eq.f32.partialorder %v22_v15, %v56_v18  ;;  %vm59_vm1 = vcmp.eq.f32.partialorder %v22_v15, %v52_v19  ;;  %p543_p4 = pnand %p542_p3, %p536_p0 }
   0xf   :  { %480 = vmatprep.subr.msk.mxu0 %vm60_vm0, %v566_v25  ;;  %496 = vmatprep.subr.msk.mxu1 %vm60_vm0, %v566_v25 }
  0x10   :  { %481 = vmatpush1.msk.msra.mxu0 %vm59_vm1, %v566_v25  ;;  %497 = vmatpush1.msk.msra.mxu1 %vm59_vm1, %v566_v25  ;;  %v31_v38 = vmul.f32 0.6666667, %v30_v21 }
  0x11   :  { %482 = vmatmul.mubr.msk.f32.vlgmr.msra.gmra.mrb[0].mxu0 %vm65_vm2, %v15_v22  ;;  %484 = vmatmul.mubr.msk.f32.vlgmr.msra.gmra.mrb[0].mxu1 %vm65_vm2, %v17_v23 }
  0x12   :  { %148 = vmatprep.mubr.f32.mxu0 %v559_v3  ;;  %160 = vmatprep.mubr.f32.mxu1 %v559_v3  ;;  %v473_v39 = vadd.f32 -1.0, %v31_v38 }
  0x13   :  { %524 = vset.pattern.permute.xlu1 %v567_v28  ;;  %526 = vset.pattern.permute.xlu0 %v568_v29 }
  0x14   :  { %289 = vperm.xlu1 %524, %v607_v5   ;;  %353 = vperm.xlu0 %526, %v607_v5   ;;  %v475_v40 = vadd.f32 0.33333334, %v473_v39  ;;  %v476_v41 = vadd.f32 -0.33333334, %v473_v39  ;;  %v474_v42 = vadd.f32 1.0, %v473_v39  ;;  %v477_v43 = vadd.f32 -1.0, %v473_v39 }
  0x15   :  { %483 = vmatmul.mubr.msk.f32.gmra.mrb[2].mxu0 %vm65_vm2, %v16_v26  ;;  %485 = vmatmul.mubr.msk.f32.gmra.mrb[2].mxu1 %vm65_vm2, %v18_v27 }
  0x16   :  { %v37_v44 = vmul.f32 %v476_v41, %v475_v40  ;;  %v43_v45 = vmul.f32 %v475_v40, %v474_v42  ;;  %v40_v48 = vmul.f32 %v476_v41, %v474_v42 }
  0x18   :  { %525 = vset.pattern.permute.xlu1 %v569_v30  ;;  %529 = vset.pattern.permute.xlu0 %v570_v31  ;;  %v38_v46 = vmul.f32 %v477_v43, %v37_v44  ;;  %v44_v47 = vmul.f32 %v477_v43, %v43_v45  ;;  %v41_v51 = vmul.f32 %v477_v43, %v40_v48 }
  0x19   :  { %315 = vperm.xlu1 %525, %v607_v5   ;;  %383 = vperm.xlu0 %529, %v607_v5   ;;  %v46_v52 = vmul.f32 %v476_v41, %v43_v45 }
  0x1a   :  { %v39_v49 = vmul.f32 -0.5625, %v38_v46  ;;  %v45_v50 = vmul.f32 -1.6875, %v44_v47  ;;  %v42_v55 = vmul.f32 1.6875, %v41_v51 }
  0x1b   :  { %v47_v56 = vmul.f32 0.5625, %v46_v52 }
  0x1c   :  { %v171_v53 = vrot.slane %v39_v49, %v619_v12  ;;  %v199_v54 = vrot.slane %v45_v50, %v619_v12  ;;  %v175_v57 = vrot.slane %v39_v49, %v616_v11  ;;  %v203_v58 = vrot.slane %v45_v50, %v616_v11 }
  0x1d   :  { %527 = vset.pattern.permute.xlu1 %v571_v32  ;;  %532 = vset.pattern.permute.xlu0 %v572_v33  ;;  %v184_v2 = vrot.slane %v42_v55, %v619_v12  ;;  %v214_v4 = vrot.slane %v47_v56, %v619_v12  ;;  %v188_v8 = vrot.slane %v42_v55, %v616_v11 }
  0x1e   :  { %367 = vperm.xlu1 %527, %v607_v5   ;;  %405 = vperm.xlu0 %532, %v607_v5   ;;  %v218_v9 = vrot.slane %v47_v56, %v616_v11 }
  0x22   :  { %528 = vset.pattern.permute.xlu1 %v573_v34  ;;  %534 = vset.pattern.permute.xlu0 %v574_v35 }
  0x23   :  { %345 = vperm.xlu1 %528, %v607_v5  }
  0x27   :  { %530 = vset.pattern.permute.xlu1 %v575_v36 }
  0x28   :  { %397 = vperm.xlu1 %530, %v607_v5  }
  0x2c   :  { %531 = vset.pattern.permute.xlu1 %v576_v37 }
  0x2d   :  { %375 = vperm.xlu1 %531, %v607_v5  }
  0x31   :  { %533 = vset.pattern.permute.xlu1 %v574_v35 }
  0x32   :  { %413 = vperm.xlu1 %533, %v607_v5  }
  0x82   :  { %v659_v59 = vpop.permute.xlu1 %297  ;;  %v276_v38 = vpop.permute.xlu0 %275 }
  0x87   :  { %v665_v21 = vpop.permute.xlu1 %307  ;;  %v282_v46 = vpop.permute.xlu0 %281 }
  0x8c   :  { %v667_v27 = vpop.permute.xlu1 %323 }
  0x93   :  { %v290_v33 = vpop.permute.xlu1 %289 }
  0x98   :  { %v316_v41 = vpop.permute.xlu1 %315 }
  0x9d   :  { %v368_v51 = vpop.permute.xlu1 %367 }
  0xe4   :  { %v144_v60 = vpop.f32.mrb[0].mxu0  ;;  %v156_v61 = vpop.f32.mrb[0].mxu1 }
  0xe5   :  { %v178_v62 = vmul.f32 %v171_v53, %v144_v60  ;;  %v146_v63 = vpop.f32.mrb[1].mxu0  ;;  %v206_v1 = vmul.f32 %v199_v54, %v156_v61  ;;  %v158_v3 = vpop.f32.mrb[1].mxu1 }
  0xe6   :  { %v179_v5 = vmul.f32 %v175_v57, %v146_v63  ;;  %v207_v7 = vmul.f32 %v203_v58, %v158_v3 }
  0xe8   :  { %v150_v10 = vpop.f32.mrb[2].mxu0  ;;  %v162_v13 = vpop.f32.mrb[2].mxu1 }
  0xe9   :  { %v191_v14 = vmul.f32 %v184_v2, %v150_v10  ;;  %v152_v15 = vpop.f32.mrb[3].mxu0  ;;  %v221_v16 = vmul.f32 %v214_v4, %v162_v13  ;;  %v164_v17 = vpop.f32.mrb[3].mxu1 }
  0xea   :  { %v192_v18 = vmul.f32 %v188_v8, %v152_v15  ;;  %v222_v19 = vmul.f32 %v218_v9, %v164_v17  ;;  %v346_v17 = vpop.permute.xlu1 %345 }
  0xeb   :  { %v193_v20 = vadd.f32 %v191_v14, %v178_v62 }
  0xec   :  { %v194_v22 = vadd.f32 %v192_v18, %v179_v5  ;;  %v338_v5 = vpop.permute.xlu0 %337 }
  0xed   :  { %v208_v23 = vadd.f32 %v206_v1, %v193_v20 }
  0xee   :  { %v209_v12 = vadd.f32 %v207_v7, %v194_v22 }
  0xef   :  { %v223_v24 = vadd.f32 %v221_v16, %v208_v23 }
  0xf0   :  { %v224_v25 = vadd.f32 %v222_v19, %v209_v12 }
  0xf1   :  { %v225_v26 = vmul.f32 15.0, %v223_v24 }
  0xf2   :  { %v226_v11 = vmul.f32 15.0, %v224_v25 }
  0xf3   :  { %v227_v28 = vmul.f32 0.33333334, %v225_v26 }
  0xf4   :  { %v228_v29 = vmul.f32 0.33333334, %v226_v11 }
  0xf5   :  { %v229_v30 = vfloor.f32 %v227_v28 }
  0xf6   :  { %v230_v31 = vfloor.f32 %v228_v29 }
  0xf7   :  { %v231_v32 = vmax.f32 %v229_v30, 0.0 }
  0xf8   :  { %v232_v34 = vmax.f32 %v230_v31, 0.0 }
  0xf9   :  { %v669_v35 = vmin.f32 %v231_v32, 4.0  ;;  %v354_v32 = vpop.permute.xlu0 %353 }
  0xfa   :  { %v671_v36 = vmin.f32 %v232_v34, 4.0 }
  0xfb   :  { %v235_v37 = vmul.f32 3.0, %v669_v35  ;;  %vm330_vm3 = vcmp.eq.f32.partialorder %v669_v35, 1.0  ;;  %vm360_vm5 = vcmp.eq.f32.partialorder %v669_v35, 2.0  ;;  %vm390_vm7 = vcmp.eq.f32.partialorder %v669_v35, 3.0 }
  0xfc   :  { %v236_v39 = vmul.f32 3.0, %v671_v36  ;;  %vm331_vm4 = vcmp.eq.f32.partialorder %v671_v36, 1.0  ;;  %vm361_vm6 = vcmp.eq.f32.partialorder %v671_v36, 2.0  ;;  %vm391_vm8 = vcmp.eq.f32.partialorder %v671_v36, 3.0 }
  0xfd   :  { %v237_v40 = vsub.f32 %v225_v26, %v235_v37  ;;  %vm420_vm9 = vcmp.eq.f32.partialorder %v669_v35, 4.0  ;;  %vm421_vm10 = vcmp.eq.f32.partialorder %v671_v36, 4.0 }
  0xfe   :  { %v238_v42 = vsub.f32 %v226_v11, %v236_v39 }
  0xff   :  { %v239_v43 = vmul.f32 0.6666667, %v237_v40 }
 0x100   :  { %v240_v44 = vmul.f32 0.6666667, %v238_v42 }
 0x101   :  { %v486_v45 = vadd.f32 -1.0, %v239_v43 }
 0x102   :  { %v487_v47 = vadd.f32 -1.0, %v240_v44 }
 0x103   :  { %v488_v48 = vadd.f32 1.0, %v486_v45  ;;  %v490_v49 = vadd.f32 0.33333334, %v486_v45  ;;  %v492_v50 = vadd.f32 -0.33333334, %v486_v45  ;;  %v494_v55 = vadd.f32 -1.0, %v486_v45  ;;  %v398_v45 = vpop.permute.xlu1 %397 }
 0x104   :  { %v489_v52 = vadd.f32 1.0, %v487_v47  ;;  %v491_v53 = vadd.f32 0.33333334, %v487_v47  ;;  %v493_v54 = vadd.f32 -0.33333334, %v487_v47  ;;  %v495_v60 = vadd.f32 -1.0, %v487_v47 }
 0x105   :  { %v251_v56 = vmul.f32 %v492_v50, %v490_v49  ;;  %v257_v57 = vmul.f32 %v492_v50, %v488_v48  ;;  %v263_v58 = vmul.f32 %v490_v49, %v488_v48 }
 0x106   :  { %v252_v61 = vmul.f32 %v493_v54, %v491_v53  ;;  %v258_v62 = vmul.f32 %v493_v54, %v489_v52  ;;  %v264_v63 = vmul.f32 %v491_v53, %v489_v52 }
 0x107   :  { %v253_v1 = vmul.f32 %v494_v55, %v251_v56  ;;  %v259_v2 = vmul.f32 %v494_v55, %v257_v57  ;;  %v269_v3 = vmul.f32 %v492_v50, %v263_v58  ;;  %v265_v4 = vmul.f32 %v494_v55, %v263_v58 }
 0x108   :  { %v254_v7 = vmul.f32 %v495_v60, %v252_v61  ;;  %v260_v8 = vmul.f32 %v495_v60, %v258_v62  ;;  %v270_v9 = vmul.f32 %v493_v54, %v264_v63  ;;  %v266_v10 = vmul.f32 %v495_v60, %v264_v63  ;;  %v384_v60 = vpop.permute.xlu0 %383 }
 0x109   :  { %v675_v13 = vmul.f32 -0.5625, %v253_v1  ;;  %v261_v14 = vmul.f32 1.6875, %v259_v2  ;;  %v677_v15 = vmul.f32 0.5625, %v269_v3  ;;  %v679_v16 = vmul.f32 -1.6875, %v265_v4 }
 0x10a   :  { %v681_v18 = vmul.f32 -0.5625, %v254_v7  ;;  %v262_v19 = vmul.f32 1.6875, %v260_v8  ;;  %v683_v20 = vmul.f32 0.5625, %v270_v9  ;;  %v685_v22 = vmul.f32 -1.6875, %v266_v10  ;;  %v376_v7 = vpop.permute.xlu1 %375 }
 0x10b   :  { %v304_v23 = vmul.f32 %v659_v59, %v675_v13  ;;  %v310_v12 = vmul.f32 %v665_v21, %v261_v14  ;;  %v326_v24 = vmul.f32 %v667_v27, %v677_v15  ;;  %v292_v25 = vmul.f32 %v290_v33, %v679_v16 }
 0x10c   :  { %v305_v26 = vmul.f32 %v659_v59, %v681_v18  ;;  %v311_v11 = vmul.f32 %v665_v21, %v262_v19  ;;  %v327_v28 = vmul.f32 %v667_v27, %v683_v20  ;;  %v318_v30 = vmul.f32 %v316_v41, %v679_v16 }
 0x10d   :  { %v312_v29 = vadd.f32 %v310_v12, %v304_v23  ;;  %v278_v31 = vmul.f32 %v276_v38, %v675_v13  ;;  %v293_v34 = vmul.f32 %v290_v33, %v685_v22  ;;  %v319_v39 = vmul.f32 %v316_v41, %v685_v22 }
 0x10e   :  { %v313_v37 = vadd.f32 %v311_v11, %v305_v26  ;;  %v279_v40 = vmul.f32 %v276_v38, %v681_v18  ;;  %v370_v43 = vmul.f32 %v368_v51, %v261_v14  ;;  %v284_v44 = vmul.f32 %v282_v46, %v261_v14 }
 0x10f   :  { %v320_v42 = vadd.f32 %v318_v30, %v312_v29  ;;  %v285_v21 = vmul.f32 %v282_v46, %v262_v19  ;;  %v371_v48 = vmul.f32 %v368_v51, %v262_v19  ;;  %v300_v49 = vmul.f32 %v659_v59, %v677_v15  ;;  %v406_v30 = vpop.permute.xlu0 %405 }
 0x110   :  { %v321_v47 = vadd.f32 %v319_v39, %v313_v37  ;;  %v301_v33 = vmul.f32 %v659_v59, %v683_v20  ;;  %v286_v41 = vadd.f32 %v284_v44, %v278_v31  ;;  %v348_v38 = vmul.f32 %v346_v17, %v679_v16 }
 0x111   :  { %v287_v50 = vadd.f32 %v285_v21, %v279_v40  ;;  %v334_v46 = vmul.f32 %v667_v27, %v675_v13  ;;  %v349_v52 = vmul.f32 %v346_v17, %v685_v22  ;;  %v335_v53 = vmul.f32 %v667_v27, %v681_v18 }
 0x112   :  { %v340_v54 = vmul.f32 %v338_v5, %v261_v14  ;;  %v341_v51 = vmul.f32 %v338_v5, %v262_v19  ;;  %v328_v55 = vadd.f32 %v326_v24, %v320_v42  ;;  %v329_v56 = vadd.f32 %v327_v28, %v321_v47 }
 0x113   :  { %v294_v57 = vadd.f32 %v292_v25, %v286_v41  ;;  %v295_v58 = vadd.f32 %v293_v34, %v287_v50  ;;  %v400_v62 = vmul.f32 %v398_v45, %v261_v14  ;;  %v401_v63 = vmul.f32 %v398_v45, %v262_v19  ;;  %v414_v34 = vpop.permute.xlu1 %413 }
 0x114   :  { %v342_v59 = vadd.f32 %v340_v54, %v334_v46  ;;  %v343_v61 = vadd.f32 %v341_v51, %v335_v53  ;;  %v364_v3 = vmul.f32 %v354_v32, %v675_v13  ;;  %v365_v4 = vmul.f32 %v354_v32, %v681_v18 }
 0x115   :  { %v302_v1 = vadd.f32 %v300_v49, %v294_v57  ;;  %v303_v2 = vadd.f32 %v301_v33, %v295_v58  ;;  %v356_v5 = vmul.f32 %v354_v32, %v677_v15  ;;  %v357_v9 = vmul.f32 %v354_v32, %v683_v20 }
 0x116   :  { %v350_v8 = vadd.f32 %v348_v38, %v342_v59  ;;  %v351_v27 = vadd.f32 %v349_v52, %v343_v61  ;;  %v372_v10 = vadd.f32 %v370_v43, %v364_v3  ;;  %v373_v17 = vadd.f32 %v371_v48, %v365_v4 }
 0x117   :  { %v378_v23 = vmul.f32 %v376_v7, %v679_v16  ;;  %v379_v14 = vmul.f32 %v376_v7, %v685_v22  ;;  %v332_v19 = vsel %vm330_vm3, %v328_v55, %v302_v1  ;;  %v333_v12 = vsel %vm331_vm4, %v329_v56, %v303_v2 }
 0x118   :  { %v358_v24 = vadd.f32 %v356_v5, %v350_v8  ;;  %v359_v25 = vadd.f32 %v357_v9, %v351_v27  ;;  %v394_v28 = vmul.f32 %v384_v60, %v675_v13  ;;  %v395_v29 = vmul.f32 %v384_v60, %v681_v18 }
 0x119   :  { %v380_v26 = vadd.f32 %v378_v23, %v372_v10  ;;  %v381_v11 = vadd.f32 %v379_v14, %v373_v17  ;;  %v386_v31 = vmul.f32 %v384_v60, %v677_v15  ;;  %v387_v32 = vmul.f32 %v384_v60, %v683_v20 }
 0x11a   :  { %v402_v37 = vadd.f32 %v400_v62, %v394_v28  ;;  %v403_v39 = vadd.f32 %v401_v63, %v395_v29  ;;  %v362_v40 = vsel %vm360_vm5, %v358_v24, %v332_v19  ;;  %v363_v42 = vsel %vm361_vm6, %v359_v25, %v333_v12 }
 0x11b   :  { %v408_v43 = vmul.f32 %v406_v30, %v679_v16  ;;  %v409_v13 = vmul.f32 %v406_v30, %v685_v22  ;;  %v388_v44 = vadd.f32 %v386_v31, %v380_v26  ;;  %v389_v18 = vadd.f32 %v387_v32, %v381_v11 }
 0x11c   :  { %v416_v21 = vmul.f32 %v414_v34, %v677_v15  ;;  %v417_v45 = vmul.f32 %v414_v34, %v683_v20  ;;  %v577_v54 = vmov 1966171168  }
 0x11d   :  { %v410_v47 = vadd.f32 %v408_v43, %v402_v37  ;;  %v411_v48 = vadd.f32 %v409_v13, %v403_v39  ;;  %v392_v49 = vsel %vm390_vm7, %v388_v44, %v362_v40  ;;  %v393_v33 = vsel %vm391_vm8, %v389_v18, %v363_v42 }
 0x11e   :  { %v440_v15 = vunpack.c.l.s4 %v577_v54 }
 0x11f   :  { %v418_v41 = vadd.f32 %v416_v21, %v410_v47  ;;  %v419_v50 = vadd.f32 %v417_v45, %v411_v48 }
 0x120   :  { %v441_v57 = vunpack.c.0.s8 %v440_v15 }
 0x121   :  { %v422_v16 = vsel %vm420_vm9, %v418_v41, %v392_v49  ;;  %v423_v22 = vsel %vm421_vm10, %v419_v50, %v393_v33 }
 0x122   :  { %v424_v38 = vrot.slane %v422_v16, 4  ;;  %v430_v46 = vrot.slane %v423_v22, 4  ;;  %v444_v35 = vsub.s32 %v441_v57, %v610_v6 }
 0x124   :  { %v425_v52 = vadd.f32 %v424_v38, %v422_v16  ;;  %v431_v53 = vadd.f32 %v430_v46, %v423_v22 }
 0x126   :  { %v426_v51 = vrot.slane %v425_v52, 2  ;;  %v432_v20 = vrot.slane %v431_v53, 2 }
 0x128   :  { %v427_v55 = vadd.f32 %v426_v51, %v425_v52  ;;  %v433_v56 = vadd.f32 %v432_v20, %v431_v53 }
 0x12a   :  { %v428_v58 = vrot.slane %v427_v55, 1  ;;  %v434_v60 = vrot.slane %v433_v56, 1 }
 0x12c   :  { %v429_v59 = vadd.f32 %v428_v58, %v427_v55  ;;  %v435_v61 = vadd.f32 %v434_v60, %v433_v56 }
 0x12e   :  { %v438_v36 = vcombine.low %v429_v59, %v435_v61 }
 0x130   :  { %v445_v62 = vrot.slane %v438_v36, %v444_v35 }
 0x132   :  { %v452_v63 = vrot.slane %v445_v62, %v444_v35 }
 0x134   :  { %458 = vst.msk [vmem:[#allocation2] sm:$0x3] %vm456_vm11, %v452_v63 }
 0x135   :  { %546 = shalt.err (!%p543_p4)
}
 0x136   :  { %s547_s26 = scalar_lea.hbm %s756_s3, 32 }
 0x137   :  { %p548_p5 = scmp.ne.s32.totalorder %s756_s3, %s547_s26  ;;  %p551_p6 = scmp.lt.u32.totalorder %s547_s26, %s756_s3 }
 0x139   :  { %p553_p7 = pnand %p551_p6, %p548_p5 }
 0x13b   :  { %556 = shalt.err (!%p553_p7)
}
 0x13c   :  { %468 = dma.vmem_to_hbm [thread:$0]  %s466_s22, 32, %s756_s3, [#allocation3]  }
 0x13d   :  { %557 = dma.done.wait [#allocation3], 32  }
 0x13e   :  { %558 = vsyncadd [#allocation3], 4294967264 }
 0x13f   :  { %472 = vsyncpa [#allocation3], 1 }

</bundles_post_ra>
